<compile_context>
chip_gen: v7x
topology: tpu7x:2x2x1
jax: 0.10.0
libtpu: 0.0.40
codegen_flags: <defaults>
</compile_context>

<pallas_src>
import jax
import jax.numpy as jnp
from jax.experimental import pallas as pl
from jax.experimental.pallas import tpu as pltpu


# ----------------------------------------------------------------------------
# Tiled linear kernel:  y = x @ W + b   (bf16 operands, f32 accumulate)
# ----------------------------------------------------------------------------
def linear_kernel(x_ref, w_ref, b_ref, o_ref):
    acc = jnp.dot(x_ref[...], w_ref[...], preferred_element_type=jnp.float32)
    o_ref[...] = (acc + b_ref[...]).astype(o_ref.dtype)


def linear_pallas(x, w, b, *, out_dtype=jnp.float32, tm_max=512):
    """x: (M, Din) bf16, w: (Din, Dout) bf16, b: (Dout,) f32 -> (M, Dout)."""
    M, Din = x.shape
    Dout = w.shape[1]

    if M <= tm_max:
        tm, Mp = M, M            # full-dim block: no (8,128) alignment needed
    else:
        tm = tm_max              # tm_max is 8/16/128-aligned
        Mp = pl.cdiv(M, tm) * tm
    if Mp != M:
        x = jnp.pad(x, ((0, Mp - M), (0, 0)))

    b2 = b.reshape(1, Dout).astype(jnp.float32)

    out = pl.pallas_call(
        linear_kernel,
        out_shape=jax.ShapeDtypeStruct((Mp, Dout), out_dtype),
        grid_spec=pltpu.PrefetchScalarGridSpec(
            num_scalar_prefetch=0,
            grid=(Mp // tm,),
            in_specs=[
                pl.BlockSpec((tm, Din), lambda i: (i, 0)),
                # Weight/bias block index never changes; kept whole in VMEM.
                pl.BlockSpec((Din, Dout), lambda i: (0, 0)),
                pl.BlockSpec((1, Dout), lambda i: (0, 0)),
            ],
            out_specs=pl.BlockSpec((tm, Dout), lambda i: (i, 0)),
        ),
        compiler_params=pltpu.CompilerParams(dimension_semantics=("parallel",)),
    )(x, w, b2)
    return out[:M]


# ----------------------------------------------------------------------------
# Head-blocked flash-attention kernel (online softmax, bf16 MXU, f32 accum)
# ----------------------------------------------------------------------------
def attn_kernel(q_ref, k_ref, v_ref, bias_ref, o_ref, m_sc, l_sc, acc_sc):
    ki = pl.program_id(2)

    @pl.when(ki == 0)
    def _():
        m_sc[...] = jnp.full_like(m_sc, -jnp.inf)
        l_sc[...] = jnp.zeros_like(l_sc)
        acc_sc[...] = jnp.zeros_like(acc_sc)

    q = q_ref[0]                                   # (H, tq, dk) bf16
    kt = k_ref[0]                                  # (H, tk, dk) bf16
    vt = v_ref[0]                                  # (H, tk, dk) bf16
    bias = bias_ref[0].astype(jnp.float32)         # (tq, tk): 0 keep, -1000 mask, -1e9 pad

    # scores = q @ k^T per head on the MXU; 1/sqrt(d_k) already folded into Wq/bq.
    s = jnp.einsum("gqd,gkd->gqk", q, kt, preferred_element_type=jnp.float32)
    # masked_fill(mask == 1, -1000.0) semantics (+ exclusion of padded keys).
    # bias == 0.0 means "keep"; nonzero values REPLACE the score (not add).
    s = jnp.where(bias[None] != 0.0, bias[None], s)

    m_prev = m_sc[...]
    m_new = jnp.maximum(m_prev, jnp.max(s, axis=-1, keepdims=True))
    alpha = jnp.exp(m_prev - m_new)
    p = jnp.exp(s - m_new)
    l_sc[...] = alpha * l_sc[...] + jnp.sum(p, axis=-1, keepdims=True)
    acc_sc[...] = alpha * acc_sc[...] + jnp.einsum(
        "gqk,gkd->gqd", p.astype(jnp.bfloat16), vt,
        preferred_element_type=jnp.float32,
    )
    m_sc[...] = m_new

    @pl.when(ki == pl.num_programs(2) - 1)
    def _():
        # Exact divide: runs once per output tile, negligible cost, tighter
        # numerics than the approx reciprocal.
        o_ref[0] = (acc_sc[...] / l_sc[...]).astype(o_ref.dtype)


def flash_attention(qh, kh, vh, bias, *, tq_max=256, tk_max=512):
    """qh/kh/vh: (B, H, L, dk) bf16; bias: (B, Lq, Lk) bf16 -> (B, H, Lq, dk) bf16."""
    B, H, Lq, dk = qh.shape
    Lk = kh.shape[2]

    def choose(L, tmax):
        if L <= tmax:
            return L, L          # full-dim block: no alignment needed
        return tmax, pl.cdiv(L, tmax) * tmax

    tq, Lq_p = choose(Lq, tq_max)
    tk, Lk_p = choose(Lk, tk_max)

    if Lq_p != Lq:
        qh = jnp.pad(qh, ((0, 0), (0, 0), (0, Lq_p - Lq), (0, 0)))
        bias = jnp.pad(bias, ((0, 0), (0, Lq_p - Lq), (0, 0)))
    if Lk_p != Lk:
        kh = jnp.pad(kh, ((0, 0), (0, 0), (0, Lk_p - Lk), (0, 0)))
        vh = jnp.pad(vh, ((0, 0), (0, 0), (0, Lk_p - Lk), (0, 0)))
        # Padded key columns are excluded from the softmax (exp -> exactly 0).
        bias = jnp.pad(bias, ((0, 0), (0, 0), (0, Lk_p - Lk)),
                       constant_values=-1e9)

    grid = (B, Lq_p // tq, Lk_p // tk)

    out = pl.pallas_call(
        attn_kernel,
        out_shape=jax.ShapeDtypeStruct((B, H, Lq_p, dk), jnp.bfloat16),
        grid_spec=pltpu.PrefetchScalarGridSpec(
            num_scalar_prefetch=0,
            grid=grid,
            in_specs=[
                pl.BlockSpec((1, H, tq, dk), lambda b, i, j: (b, 0, i, 0)),
                pl.BlockSpec((1, H, tk, dk), lambda b, i, j: (b, 0, j, 0)),
                pl.BlockSpec((1, H, tk, dk), lambda b, i, j: (b, 0, j, 0)),
                # One bias tile per batch element, shared by all H heads.
                pl.BlockSpec((1, tq, tk), lambda b, i, j: (b, i, j)),
            ],
            out_specs=pl.BlockSpec((1, H, tq, dk), lambda b, i, j: (b, 0, i, 0)),
            scratch_shapes=[
                pltpu.VMEM((H, tq, 1), jnp.float32),   # running max m
                pltpu.VMEM((H, tq, 1), jnp.float32),   # running sum l
                pltpu.VMEM((H, tq, dk), jnp.float32),  # output accumulator
            ],
        ),
        compiler_params=pltpu.CompilerParams(
            dimension_semantics=("parallel", "parallel", "arbitrary")
        ),
    )(qh, kh, vh, bias)
    return out[:, :, :Lq, :]


# ----------------------------------------------------------------------------
# Full module forward
# ----------------------------------------------------------------------------
def multi_head_attention(q, k, v, mask, params, *, num_heads):
    """params use torch nn.Linear convention (W is (out, in), bias is (out,))."""
    B, Lq, D = q.shape
    Lk = k.shape[1]
    Lv = v.shape[1]
    assert Lk == Lv, "key and value sequence lengths must match"
    d_k = D // num_heads
    scale = 1.0 / (d_k ** 0.5)

    # x @ W + b form, bf16 weights; fold 1/sqrt(d_k) into the Q projection.
    wq = (params["wq"].T * scale).astype(jnp.bfloat16)
    bq = params["bq"] * scale
    wk = params["wk"].T.astype(jnp.bfloat16)
    bk = params["bk"]
    wv = params["wv"].T.astype(jnp.bfloat16)
    bv = params["bv"]
    wo = params["wo"].T.astype(jnp.bfloat16)
    bo = params["bo"]

    # Batched projections as (B*L, D) x (D, D) bf16 GEMMs, emitting bf16
    # activations directly for the attention kernel (no extra cast pass).
    q_p = linear_pallas(q.reshape(B * Lq, D).astype(jnp.bfloat16), wq, bq,
                        out_dtype=jnp.bfloat16)
    k_p = linear_pallas(k.reshape(B * Lk, D).astype(jnp.bfloat16), wk, bk,
                        out_dtype=jnp.bfloat16)
    v_p = linear_pallas(v.reshape(B * Lv, D).astype(jnp.bfloat16), wv, bv,
                        out_dtype=jnp.bfloat16)

    # Head split -> (B, H, L, d_k) (single XLA relayout per tensor).
    def to_heads(x, L):
        return jnp.transpose(x.reshape(B, L, num_heads, d_k), (0, 2, 1, 3))

    qh = to_heads(q_p, Lq)
    kh = to_heads(k_p, Lk)
    vh = to_heads(v_p, Lv)

    # One bf16 mask-bias plane per batch element (shared by all heads in-kernel).
    bias = jnp.where(mask[:, 0, :, :] == 1, -1000.0, 0.0).astype(jnp.bfloat16)

    ctx = flash_attention(qh, kh, vh, bias)            # (B, H, Lq, d_k) bf16
    ctx = jnp.transpose(ctx, (0, 2, 1, 3)).reshape(B * Lq, D)

    out = linear_pallas(ctx, wo, bo, out_dtype=jnp.float32).reshape(B, Lq, D)
    return out


# ----------------------------------------------------------------------------
# Pure-JAX reference (mirrors the PyTorch forward exactly, all f32)
# ----------------------------------------------------------------------------
def reference_mha(q, k, v, mask, params, *, num_heads):
    B, Lq, D = q.shape
    Lk = k.shape[1]
    Lv = v.shape[1]
    d_k = D // num_heads

    def linear(x, w, b):  # torch convention: x @ W.T + b
        return x @ w.T + b

    q_p = linear(q, params["wq"], params["bq"]).reshape(B, Lq, num_heads, d_k)
    k_p = linear(k, params["wk"], params["bk"]).reshape(B, Lk, num_heads, d_k)
    v_p = linear(v, params["wv"], params["bv"]).reshape(B, Lv, num_heads, d_k)
    q_p = jnp.transpose(q_p, (0, 2, 1, 3))
    k_p = jnp.transpose(k_p, (0, 2, 1, 3))
    v_p = jnp.transpose(v_p, (0, 2, 1, 3))
    s = jnp.matmul(q_p, jnp.transpose(k_p, (0, 1, 3, 2))) / (d_k ** 0.5)
    s = jnp.where(mask == 1, -1000.0, s)
    s = jax.nn.softmax(s, axis=-1)
    ctx = jnp.matmul(s, v_p)                              # (B, H, Lq, d_k)
    ctx = jnp.transpose(ctx, (0, 2, 1, 3)).reshape(B, Lq, D)
    return linear(ctx, params["wo"], params["bo"])


if __name__ == "__main__":
    B, Lq, Lk, Lv = 2, 8, 8, 8
    d_model, num_heads = 32, 4

    key = jax.random.PRNGKey(0)
    keys = jax.random.split(key, 12)

    q = jax.random.normal(keys[0], (B, Lq, d_model), jnp.float32)
    k = jax.random.normal(keys[1], (B, Lk, d_model), jnp.float32)
    v = jax.random.normal(keys[2], (B, Lv, d_model), jnp.float32)
    # mask: 1 = masked. Deterministic pattern (mask out the last 2 key slots).
    mask = jnp.zeros((B, 1, Lq, Lk), jnp.int32).at[:, :, :, -2:].set(1)

    scale = 1.0 / (d_model ** 0.5)
    params = {
        "wq": jax.random.normal(keys[3], (d_model, d_model), jnp.float32) * scale,
        "bq": jax.random.normal(keys[4], (d_model,), jnp.float32) * 0.01,
        "wk": jax.random.normal(keys[5], (d_model, d_model), jnp.float32) * scale,
        "bk": jax.random.normal(keys[6], (d_model,), jnp.float32) * 0.01,
        "wv": jax.random.normal(keys[7], (d_model, d_model), jnp.float32) * scale,
        "bv": jax.random.normal(keys[8], (d_model,), jnp.float32) * 0.01,
        "wo": jax.random.normal(keys[9], (d_model, d_model), jnp.float32) * scale,
        "bo": jax.random.normal(keys[10], (d_model,), jnp.float32) * 0.01,
    }

    mha = jax.jit(multi_head_attention, static_argnames=("num_heads",))
    out = mha(q, k, v, mask, params, num_heads=num_heads)
    out = jax.block_until_ready(out)

    ref = reference_mha(q, k, v, mask, params, num_heads=num_heads)
    assert out.shape == (B, Lq, d_model)
    # bf16 operands on every MXU matmul (f32 accumulation) -> ~1e-2-level
    # relative error vs the pure-f32 reference.
    rel_err = float(jnp.max(jnp.abs(out - ref)) / jnp.max(jnp.abs(ref)))
    assert rel_err < 5e-2, f"mismatch vs reference: rel_err={rel_err}"

    print("KERNEL_OK")
</pallas_src>

<mosaic_0001>
module attributes {stable_mosaic.version = 11 : i64} {
  func.func @linear_kernel(%arg0: i32, %arg1: memref<16x32xbf16, #tpu.memory_space<vmem>>, %arg2: memref<32x32xbf16, #tpu.memory_space<vmem>>, %arg3: memref<1x32xf32, #tpu.memory_space<vmem>>, %arg4: memref<16x32xbf16, #tpu.memory_space<vmem>>) attributes {dimension_semantics = [#tpu.dimension_semantics<parallel>], iteration_bounds = array<i64: 1>, scalar_prefetch = 0 : i64, scratch_operands = 0 : i64, tpu.core_type = #tpu.core_type<tc>, window_params = [{transform_indices = @transform_0, window_bounds = array<i64: 16, 32>}, {pipeline_mode = #tpu.pipeline_mode<synchronous>, transform_indices = @transform_1, window_bounds = array<i64: 32, 32>}, {pipeline_mode = #tpu.pipeline_mode<synchronous>, transform_indices = @transform_2, window_bounds = array<i64: 1, 32>}, {transform_indices = @transform_3, window_bounds = array<i64: 16, 32>}]} {
    %c0 = arith.constant 0 : index
    %c0_0 = arith.constant 0 : index
    %0 = vector.load %arg1[%c0, %c0_0] : memref<16x32xbf16, #tpu.memory_space<vmem>>, vector<16x32xbf16>
    %c0_1 = arith.constant 0 : index
    %c0_2 = arith.constant 0 : index
    %1 = vector.load %arg2[%c0_1, %c0_2] : memref<32x32xbf16, #tpu.memory_space<vmem>>, vector<32x32xbf16>
    %cst = arith.constant dense<0.000000e+00> : vector<16x32xf32>
    %2 = tpu.matmul %0, %1, %cst {dimension_numbers = #tpu.dot_dimension_numbers<[1], [0], [0], [1], [0, 0, 1, 1], [], []>} : vector<16x32xbf16>, vector<32x32xbf16>, vector<16x32xf32> -> vector<16x32xf32>
    %c0_3 = arith.constant 0 : index
    %c0_4 = arith.constant 0 : index
    %3 = vector.load %arg3[%c0_3, %c0_4] : memref<1x32xf32, #tpu.memory_space<vmem>>, vector<1x32xf32>
    %4 = vector.broadcast %3 : vector<1x32xf32> to vector<16x32xf32>
    %5 = arith.addf %2, %4 : vector<16x32xf32>
    %6 = arith.truncf %5 : vector<16x32xf32> to vector<16x32xbf16>
    %c0_5 = arith.constant 0 : index
    %c0_6 = arith.constant 0 : index
    %7 = vector.load %arg4[%c0_5, %c0_6] : memref<16x32xbf16, #tpu.memory_space<vmem>>, vector<16x32xbf16>
    tpu.vector_store %arg4[%c0_5, %c0_6], %6 {strides = array<i32>} : memref<16x32xbf16, #tpu.memory_space<vmem>>, vector<16x32xbf16>,
    return
  }
  func.func @transform_0(%arg0: i32) -> (i32, i32) {
    %c0_i32 = arith.constant 0 : i32
    %c0_i32_0 = arith.constant 0 : i32
    return %arg0, %c0_i32 : i32, i32
  }
  func.func @transform_1(%arg0: i32) -> (i32, i32) {
    %c0_i32 = arith.constant 0 : i32
    %c0_i32_0 = arith.constant 0 : i32
    %c0_i32_1 = arith.constant 0 : i32
    return %c0_i32, %c0_i32_0 : i32, i32
  }
  func.func @transform_2(%arg0: i32) -> (i32, i32) {
    %c0_i32 = arith.constant 0 : i32
    %c0_i32_0 = arith.constant 0 : i32
    %c0_i32_1 = arith.constant 0 : i32
    return %c0_i32, %c0_i32_0 : i32, i32
  }
  func.func @transform_3(%arg0: i32) -> (i32, i32) {
    %c0_i32 = arith.constant 0 : i32
    %c0_i32_0 = arith.constant 0 : i32
    return %arg0, %c0_i32 : i32, i32
  }
}

module attributes {stable_mosaic.version = 11 : i64} {
  func.func @attn_kernel(%arg0: i32, %arg1: i32, %arg2: i32, %arg3: memref<1x4x8x8xbf16, #tpu.memory_space<vmem>>, %arg4: memref<1x4x8x8xbf16, #tpu.memory_space<vmem>>, %arg5: memref<1x4x8x8xbf16, #tpu.memory_space<vmem>>, %arg6: memref<1x8x8xbf16, #tpu.memory_space<vmem>>, %arg7: memref<1x4x8x8xbf16, #tpu.memory_space<vmem>>, %arg8: memref<4x8x1xf32, #tpu.memory_space<vmem>>, %arg9: memref<4x8x1xf32, #tpu.memory_space<vmem>>, %arg10: memref<4x8x8xf32, #tpu.memory_space<vmem>>) attributes {dimension_semantics = [#tpu.dimension_semantics<parallel>, #tpu.dimension_semantics<parallel>, #tpu.dimension_semantics<arbitrary>], iteration_bounds = array<i64: 2, 1, 1>, scalar_prefetch = 0 : i64, scratch_operands = 3 : i64, tpu.core_type = #tpu.core_type<tc>, window_params = [{transform_indices = @transform_0, window_bounds = array<i64: 1, 4, 8, 8>}, {transform_indices = @transform_1, window_bounds = array<i64: 1, 4, 8, 8>}, {transform_indices = @transform_2, window_bounds = array<i64: 1, 4, 8, 8>}, {transform_indices = @transform_3, window_bounds = array<i64: 1, 8, 8>}, {transform_indices = @transform_4, window_bounds = array<i64: 1, 4, 8, 8>}]} {
    %c0_i32 = arith.constant 0 : i32
    %0 = arith.cmpi eq, %arg2, %c0_i32 : i32
    %1 = arith.extui %0 : i1 to i32
    %c0_i32_0 = arith.constant 0 : i32
    %2 = arith.cmpi ne, %1, %c0_i32_0 : i32
    scf.if %2 {
      %cst_39 = arith.constant 0xFF800000 : f32
      %48 = vector.broadcast %cst_39 : f32 to vector<4x8x1xf32>
      %c0_40 = arith.constant 0 : index
      %c0_41 = arith.constant 0 : index
      %c0_42 = arith.constant 0 : index
      %49 = vector.load %arg8[%c0_40, %c0_41, %c0_42] : memref<4x8x1xf32, #tpu.memory_space<vmem>>, vector<4x8x1xf32>
      tpu.vector_store %arg8[%c0_40, %c0_41, %c0_42], %48 {strides = array<i32>} : memref<4x8x1xf32, #tpu.memory_space<vmem>>, vector<4x8x1xf32>,
      %cst_43 = arith.constant 0.000000e+00 : f32
      %50 = vector.broadcast %cst_43 : f32 to vector<4x8x1xf32>
      %c0_44 = arith.constant 0 : index
      %c0_45 = arith.constant 0 : index
      %c0_46 = arith.constant 0 : index
      %51 = vector.load %arg9[%c0_44, %c0_45, %c0_46] : memref<4x8x1xf32, #tpu.memory_space<vmem>>, vector<4x8x1xf32>
      tpu.vector_store %arg9[%c0_44, %c0_45, %c0_46], %50 {strides = array<i32>} : memref<4x8x1xf32, #tpu.memory_space<vmem>>, vector<4x8x1xf32>,
      %cst_47 = arith.constant 0.000000e+00 : f32
      %52 = vector.broadcast %cst_47 : f32 to vector<4x8x8xf32>
      %c0_48 = arith.constant 0 : index
      %c0_49 = arith.constant 0 : index
      %c0_50 = arith.constant 0 : index
      %53 = vector.load %arg10[%c0_48, %c0_49, %c0_50] : memref<4x8x8xf32, #tpu.memory_space<vmem>>, vector<4x8x8xf32>
      tpu.vector_store %arg10[%c0_48, %c0_49, %c0_50], %52 {strides = array<i32>} : memref<4x8x8xf32, #tpu.memory_space<vmem>>, vector<4x8x8xf32>,
    } else {
    }
    %c0 = arith.constant 0 : index
    %c0_1 = arith.constant 0 : index
    %c0_2 = arith.constant 0 : index
    %c0_3 = arith.constant 0 : index
    %3 = vector.load %arg3[%c0, %c0_1, %c0_2, %c0_3] : memref<1x4x8x8xbf16, #tpu.memory_space<vmem>>, vector<1x4x8x8xbf16>
    %4 = vector.shape_cast %3 : vector<1x4x8x8xbf16> to vector<4x8x8xbf16>
    %c0_4 = arith.constant 0 : index
    %c0_5 = arith.constant 0 : index
    %c0_6 = arith.constant 0 : index
    %c0_7 = arith.constant 0 : index
    %5 = vector.load %arg4[%c0_4, %c0_5, %c0_6, %c0_7] : memref<1x4x8x8xbf16, #tpu.memory_space<vmem>>, vector<1x4x8x8xbf16>
    %6 = vector.shape_cast %5 : vector<1x4x8x8xbf16> to vector<4x8x8xbf16>
    %c0_8 = arith.constant 0 : index
    %c0_9 = arith.constant 0 : index
    %c0_10 = arith.constant 0 : index
    %c0_11 = arith.constant 0 : index
    %7 = vector.load %arg5[%c0_8, %c0_9, %c0_10, %c0_11] : memref<1x4x8x8xbf16, #tpu.memory_space<vmem>>, vector<1x4x8x8xbf16>
    %8 = vector.shape_cast %7 : vector<1x4x8x8xbf16> to vector<4x8x8xbf16>
    %c0_12 = arith.constant 0 : index
    %c0_13 = arith.constant 0 : index
    %c0_14 = arith.constant 0 : index
    %9 = vector.load %arg6[%c0_12, %c0_13, %c0_14] : memref<1x8x8xbf16, #tpu.memory_space<vmem>>, vector<1x8x8xbf16>
    %10 = vector.shape_cast %9 : vector<1x8x8xbf16> to vector<8x8xbf16>
    %11 = arith.extf %10 : vector<8x8xbf16> to vector<8x8xf32>
    "tpu.trace_start"() <{level = 10 : i32, message = "gqd,gkd->gqk"}> : () -> ()
    %cst = arith.constant dense<0.000000e+00> : vector<4x8x8xf32>
    %12 = tpu.matmul %4, %6, %cst {dimension_numbers = #tpu.dot_dimension_numbers<[2], [2], [1], [1], [0, 0, 0, 1, 1, 1], [0], [0]>} : vector<4x8x8xbf16>, vector<4x8x8xbf16>, vector<4x8x8xf32> -> vector<4x8x8xf32>
    "tpu.trace_stop"() : () -> ()
    %13 = vector.shape_cast %11 : vector<8x8xf32> to vector<1x8x8xf32>
    %cst_15 = arith.constant 0.000000e+00 : f32
    %14 = vector.broadcast %cst_15 : f32 to vector<1x8x8xf32>
    %15 = arith.cmpf one, %13, %14 : vector<1x8x8xf32>
    %16 = vector.shape_cast %11 : vector<8x8xf32> to vector<1x8x8xf32>
    %17 = vector.shape_cast %15 : vector<1x8x8xi1> to vector<1x8x8xi1>
    %18 = vector.broadcast %17 : vector<1x8x8xi1> to vector<4x8x8xi1>
    %19 = vector.shape_cast %16 : vector<1x8x8xf32> to vector<1x8x8xf32>
    %20 = vector.broadcast %19 : vector<1x8x8xf32> to vector<4x8x8xf32>
    %21 = arith.select %18, %20, %12 : vector<4x8x8xi1>, vector<4x8x8xf32>
    %c0_16 = arith.constant 0 : index
    %c0_17 = arith.constant 0 : index
    %c0_18 = arith.constant 0 : index
    %22 = vector.load %arg8[%c0_16, %c0_17, %c0_18] : memref<4x8x1xf32, #tpu.memory_space<vmem>>, vector<4x8x1xf32>
    %cst_19 = arith.constant dense<0xFF800000> : vector<4x8xf32>
    %23 = vector.multi_reduction <maximumf>, %21, %cst_19 [2] : vector<4x8x8xf32> to vector<4x8xf32>
    %24 = vector.shape_cast %23 : vector<4x8xf32> to vector<4x8x1xf32>
    %25 = arith.maximumf %22, %24 : vector<4x8x1xf32>
    %26 = arith.subf %22, %25 : vector<4x8x1xf32>
    %27 = math.exp %26 : vector<4x8x1xf32>
    %28 = vector.broadcast %25 : vector<4x8x1xf32> to vector<4x8x8xf32>
    %29 = arith.subf %21, %28 : vector<4x8x8xf32>
    %30 = math.exp %29 : vector<4x8x8xf32>
    %c0_20 = arith.constant 0 : index
    %c0_21 = arith.constant 0 : index
    %c0_22 = arith.constant 0 : index
    %31 = vector.load %arg9[%c0_20, %c0_21, %c0_22] : memref<4x8x1xf32, #tpu.memory_space<vmem>>, vector<4x8x1xf32>
    %32 = arith.mulf %27, %31 : vector<4x8x1xf32>
    %cst_23 = arith.constant dense<0.000000e+00> : vector<4x8xf32>
    %33 = vector.multi_reduction <add>, %30, %cst_23 [2] : vector<4x8x8xf32> to vector<4x8xf32>
    %34 = vector.shape_cast %33 : vector<4x8xf32> to vector<4x8x1xf32>
    %35 = arith.addf %32, %34 : vector<4x8x1xf32>
    %c0_24 = arith.constant 0 : index
    %c0_25 = arith.constant 0 : index
    %c0_26 = arith.constant 0 : index
    %36 = vector.load %arg9[%c0_24, %c0_25, %c0_26] : memref<4x8x1xf32, #tpu.memory_space<vmem>>, vector<4x8x1xf32>
    tpu.vector_store %arg9[%c0_24, %c0_25, %c0_26], %35 {strides = array<i32>} : memref<4x8x1xf32, #tpu.memory_space<vmem>>, vector<4x8x1xf32>,
    %c0_27 = arith.constant 0 : index
    %c0_28 = arith.constant 0 : index
    %c0_29 = arith.constant 0 : index
    %37 = vector.load %arg10[%c0_27, %c0_28, %c0_29] : memref<4x8x8xf32, #tpu.memory_space<vmem>>, vector<4x8x8xf32>
    %38 = vector.broadcast %27 : vector<4x8x1xf32> to vector<4x8x8xf32>
    %39 = arith.mulf %38, %37 : vector<4x8x8xf32>
    %40 = arith.truncf %30 : vector<4x8x8xf32> to vector<4x8x8xbf16>
    "tpu.trace_start"() <{level = 10 : i32, message = "gqk,gkd->gqd"}> : () -> ()
    %cst_30 = arith.constant dense<0.000000e+00> : vector<4x8x8xf32>
    %41 = tpu.matmul %40, %8, %cst_30 {dimension_numbers = #tpu.dot_dimension_numbers<[2], [1], [1], [2], [0, 0, 0, 1, 1, 2], [0], [0]>} : vector<4x8x8xbf16>, vector<4x8x8xbf16>, vector<4x8x8xf32> -> vector<4x8x8xf32>
    "tpu.trace_stop"() : () -> ()
    %42 = arith.addf %39, %41 : vector<4x8x8xf32>
    %c0_31 = arith.constant 0 : index
    %c0_32 = arith.constant 0 : index
    %c0_33 = arith.constant 0 : index
    %43 = vector.load %arg10[%c0_31, %c0_32, %c0_33] : memref<4x8x8xf32, #tpu.memory_space<vmem>>, vector<4x8x8xf32>
    tpu.vector_store %arg10[%c0_31, %c0_32, %c0_33], %42 {strides = array<i32>} : memref<4x8x8xf32, #tpu.memory_space<vmem>>, vector<4x8x8xf32>,
    %c0_34 = arith.constant 0 : index
    %c0_35 = arith.constant 0 : index
    %c0_36 = arith.constant 0 : index
    %44 = vector.load %arg8[%c0_34, %c0_35, %c0_36] : memref<4x8x1xf32, #tpu.memory_space<vmem>>, vector<4x8x1xf32>
    tpu.vector_store %arg8[%c0_34, %c0_35, %c0_36], %25 {strides = array<i32>} : memref<4x8x1xf32, #tpu.memory_space<vmem>>, vector<4x8x1xf32>,
    %c0_i32_37 = arith.constant 0 : i32
    %45 = arith.cmpi eq, %arg2, %c0_i32_37 : i32
    %46 = arith.extui %45 : i1 to i32
    %c0_i32_38 = arith.constant 0 : i32
    %47 = arith.cmpi ne, %46, %c0_i32_38 : i32
    scf.if %47 {
      %c0_39 = arith.constant 0 : index
      %c0_40 = arith.constant 0 : index
      %c0_41 = arith.constant 0 : index
      %48 = vector.load %arg10[%c0_39, %c0_40, %c0_41] : memref<4x8x8xf32, #tpu.memory_space<vmem>>, vector<4x8x8xf32>
      %c0_42 = arith.constant 0 : index
      %c0_43 = arith.constant 0 : index
      %c0_44 = arith.constant 0 : index
      %49 = vector.load %arg9[%c0_42, %c0_43, %c0_44] : memref<4x8x1xf32, #tpu.memory_space<vmem>>, vector<4x8x1xf32>
      %50 = vector.broadcast %49 : vector<4x8x1xf32> to vector<4x8x8xf32>
      %51 = arith.divf %48, %50 : vector<4x8x8xf32>
      %52 = arith.truncf %51 : vector<4x8x8xf32> to vector<4x8x8xbf16>
      %c0_45 = arith.constant 0 : index
      %c0_46 = arith.constant 0 : index
      %c0_47 = arith.constant 0 : index
      %c0_48 = arith.constant 0 : index
      %53 = vector.load %arg7[%c0_45, %c0_46, %c0_47, %c0_48] : memref<1x4x8x8xbf16, #tpu.memory_space<vmem>>, vector<1x4x8x8xbf16>
      %54 = vector.shape_cast %53 : vector<1x4x8x8xbf16> to vector<4x8x8xbf16>
      %55 = vector.shape_cast %52 : vector<4x8x8xbf16> to vector<1x4x8x8xbf16>
      tpu.vector_store %arg7[%c0_45, %c0_46, %c0_47, %c0_48], %55 {strides = array<i32>} : memref<1x4x8x8xbf16, #tpu.memory_space<vmem>>, vector<1x4x8x8xbf16>,
    } else {
    }
    return
  }
  func.func @transform_0(%arg0: i32, %arg1: i32, %arg2: i32) -> (i32, i32, i32, i32) {
    %c0_i32 = arith.constant 0 : i32
    %c0_i32_0 = arith.constant 0 : i32
    %c0_i32_1 = arith.constant 0 : i32
    return %arg0, %c0_i32, %arg1, %c0_i32_0 : i32, i32, i32, i32
  }
  func.func @transform_1(%arg0: i32, %arg1: i32, %arg2: i32) -> (i32, i32, i32, i32) {
    %c0_i32 = arith.constant 0 : i32
    %c0_i32_0 = arith.constant 0 : i32
    %c0_i32_1 = arith.constant 0 : i32
    return %arg0, %c0_i32, %arg2, %c0_i32_0 : i32, i32, i32, i32
  }
  func.func @transform_2(%arg0: i32, %arg1: i32, %arg2: i32) -> (i32, i32, i32, i32) {
    %c0_i32 = arith.constant 0 : i32
    %c0_i32_0 = arith.constant 0 : i32
    %c0_i32_1 = arith.constant 0 : i32
    return %arg0, %c0_i32, %arg2, %c0_i32_0 : i32, i32, i32, i32
  }
  func.func @transform_3(%arg0: i32, %arg1: i32, %arg2: i32) -> (i32, i32, i32) {
    %c0_i32 = arith.constant 0 : i32
    return %arg0, %arg1, %arg2 : i32, i32, i32
  }
  func.func @transform_4(%arg0: i32, %arg1: i32, %arg2: i32) -> (i32, i32, i32, i32) {
    %c0_i32 = arith.constant 0 : i32
    %c0_i32_0 = arith.constant 0 : i32
    %c0_i32_1 = arith.constant 0 : i32
    return %arg0, %c0_i32, %arg1, %c0_i32_0 : i32, i32, i32, i32
  }
}

module attributes {stable_mosaic.version = 11 : i64} {
  func.func @linear_kernel(%arg0: i32, %arg1: memref<16x32xbf16, #tpu.memory_space<vmem>>, %arg2: memref<32x32xbf16, #tpu.memory_space<vmem>>, %arg3: memref<1x32xf32, #tpu.memory_space<vmem>>, %arg4: memref<16x32xf32, #tpu.memory_space<vmem>>) attributes {dimension_semantics = [#tpu.dimension_semantics<parallel>], iteration_bounds = array<i64: 1>, scalar_prefetch = 0 : i64, scratch_operands = 0 : i64, tpu.core_type = #tpu.core_type<tc>, window_params = [{transform_indices = @transform_0, window_bounds = array<i64: 16, 32>}, {pipeline_mode = #tpu.pipeline_mode<synchronous>, transform_indices = @transform_1, window_bounds = array<i64: 32, 32>}, {pipeline_mode = #tpu.pipeline_mode<synchronous>, transform_indices = @transform_2, window_bounds = array<i64: 1, 32>}, {transform_indices = @transform_3, window_bounds = array<i64: 16, 32>}]} {
    %c0 = arith.constant 0 : index
    %c0_0 = arith.constant 0 : index
    %0 = vector.load %arg1[%c0, %c0_0] : memref<16x32xbf16, #tpu.memory_space<vmem>>, vector<16x32xbf16>
    %c0_1 = arith.constant 0 : index
    %c0_2 = arith.constant 0 : index
    %1 = vector.load %arg2[%c0_1, %c0_2] : memref<32x32xbf16, #tpu.memory_space<vmem>>, vector<32x32xbf16>
    %cst = arith.constant dense<0.000000e+00> : vector<16x32xf32>
    %2 = tpu.matmul %0, %1, %cst {dimension_numbers = #tpu.dot_dimension_numbers<[1], [0], [0], [1], [0, 0, 1, 1], [], []>} : vector<16x32xbf16>, vector<32x32xbf16>, vector<16x32xf32> -> vector<16x32xf32>
    %c0_3 = arith.constant 0 : index
    %c0_4 = arith.constant 0 : index
    %3 = vector.load %arg3[%c0_3, %c0_4] : memref<1x32xf32, #tpu.memory_space<vmem>>, vector<1x32xf32>
    %4 = vector.broadcast %3 : vector<1x32xf32> to vector<16x32xf32>
    %5 = arith.addf %2, %4 : vector<16x32xf32>
    %c0_5 = arith.constant 0 : index
    %c0_6 = arith.constant 0 : index
    %6 = vector.load %arg4[%c0_5, %c0_6] : memref<16x32xf32, #tpu.memory_space<vmem>>, vector<16x32xf32>
    tpu.vector_store %arg4[%c0_5, %c0_6], %5 {strides = array<i32>} : memref<16x32xf32, #tpu.memory_space<vmem>>, vector<16x32xf32>,
    return
  }
  func.func @transform_0(%arg0: i32) -> (i32, i32) {
    %c0_i32 = arith.constant 0 : i32
    %c0_i32_0 = arith.constant 0 : i32
    return %arg0, %c0_i32 : i32, i32
  }
  func.func @transform_1(%arg0: i32) -> (i32, i32) {
    %c0_i32 = arith.constant 0 : i32
    %c0_i32_0 = arith.constant 0 : i32
    %c0_i32_1 = arith.constant 0 : i32
    return %c0_i32, %c0_i32_0 : i32, i32
  }
  func.func @transform_2(%arg0: i32) -> (i32, i32) {
    %c0_i32 = arith.constant 0 : i32
    %c0_i32_0 = arith.constant 0 : i32
    %c0_i32_1 = arith.constant 0 : i32
    return %c0_i32, %c0_i32_0 : i32, i32
  }
  func.func @transform_3(%arg0: i32) -> (i32, i32) {
    %c0_i32 = arith.constant 0 : i32
    %c0_i32_0 = arith.constant 0 : i32
    return %arg0, %c0_i32 : i32, i32
  }
}

</mosaic_0001>

<bundles_post_ra>
// kernel: multi_head_attention.6
= control target key start
LH: loop header
LB: loop body
LE: loop exit
PB: predicated region body
PF: predicated region fallthrough
CT: control target
= control target key end

     0   :  { %v130_v0 = vmov 0.0   ;;  %vm131_vm0 = vmmov 0   ;;  %vm45_vm1 = vcmask 261120   ;;  %vm98_vm2 = vcmask 257024   ;;  %s170_s1 = inlined_call_operand.vmem [shape: bf16[32,32], index: 1, kind: input, shape index: {}]   ;;  %s171_s0 = inlined_call_operand.vmem [shape: bf16[16,32], index: 0, kind: input, shape index: {}]   ;;  %s172_s2 = inlined_call_operand.vmem [shape: f32[1,32], index: 2, kind: input, shape index: {}]   ;;  %s173_s3 = inlined_call_operand.vmem [shape: bf16[16,32], index: 3, kind: output, shape index: {}]  }
   0x1   :  { %117 = vmatprep.subr.bf16.mxu0 %v130_v0  ;;  %v127_v1 = vld [vmem:[%s170_s1] sm:$0xff]   ;;  %121 = vmatprep.mubr.msk.bf16.mxu0 %vm131_vm0, %v130_v0  ;;  %v128_v2 = vld [vmem:[%s170_s1 + $0x8] sm:$0xff]  }
   0x2   :  { %118 = vmatpush3.bf16.msra.mxu0 %v127_v1  ;;  %v129_v3 = vld [vmem:[%s171_s0] sm:$0xff]  }
   0x3   :  { %119 = vmatprep.subr.bf16.mxu0 %v130_v0  ;;  %v105_v4 = vld [vmem:[%s172_s2] ss:$0 sm:$0xff] }
   0x6   :  { %120 = vmatpush3.bf16.msra.mxu0 %v128_v2 }
   0x9   :  { %122 = vmatmul.mubr.msk.bf16.vlgmr.msra.gmra.mrb[0].mxu0 %vm45_vm1, %v129_v3 }
  0xdc   :  { %v83_v5 = vpop.f32.mrb[0].mxu0 }
  0xdd   :  { %v84_v6 = vadd.f32 %v105_v4, %v83_v5  ;;  %v123_v7 = vpop.f32.mrb[1].mxu0 }
  0xde   :  { %v86_v8 = vpop.f32.mrb[2].mxu0 }
  0xdf   :  { %v112_v9 = vpack.c.bf16 %v84_v6, %v84_v6  ;;  %v87_v10 = vadd.f32 %v105_v4, %v86_v8  ;;  %v124_v11 = vpop.f32.mrb[3].mxu0 }
  0xe1   :  { %99 = vst.msk [vmem:[%s173_s3] sm:$0xf] %vm98_vm2, %v112_v9  ;;  %v113_v12 = vpack.c.bf16 %v87_v10, %v87_v10 }
  0xe3   :  { %100 = vst.msk [vmem:[%s173_s3 + $0x4] sm:$0xf] %vm98_vm2, %v113_v12 }

// kernel: multi_head_attention.9
= control target key start
LH: loop header
LB: loop body
LE: loop exit
PB: predicated region body
PF: predicated region fallthrough
CT: control target
= control target key end

     0   :  { %v157_v1 = vmov 0.0   ;;  %vm158_vm0 = vmmov 0   ;;  %s206_s0 = inlined_call_operand.vmem [shape: bf16[16,32], index: 0, kind: input, shape index: {}]   ;;  %s207_s1 = inlined_call_operand.vmem [shape: bf16[32,32], index: 1, kind: input, shape index: {}]   ;;  %s208_s2 = inlined_call_operand.vmem [shape: f32[1,32], index: 2, kind: input, shape index: {}]   ;;  %s209_s3 = inlined_call_operand.hbm [shape: f32[16,32], index: 3, kind: output, shape index: {}]  }
   0x1   :  { %v130_v0 = vld [vmem:[%s207_s1] sm:$0xff]   ;;  %117 = vmatprep.subr.bf16.mxu0 %v157_v1  ;;  %v131_v2 = vld [vmem:[%s207_s1 + $0x8] sm:$0xff]   ;;  %121 = vmatprep.mubr.msk.bf16.mxu0 %vm158_vm0, %v157_v1 }
   0x2   :  { %118 = vmatpush3.bf16.msra.mxu0 %v130_v0 }
   0x3   :  { %119 = vmatprep.subr.bf16.mxu0 %v157_v1 }
   0x4   :  { %8 = vsyncpa [#allocation3], 0  ;;  %v132_v3 = vld [vmem:[%s206_s0] sm:$0xff]   ;;  %vm46_vm1 = vcmask 261120   ;;  %s159_s20 = smov [#allocation2]  }
   0x5   :  { %v109_v4 = vld [vmem:[%s208_s2] ss:$0 sm:$0xff]  ;;  %s98_s21 = sshll.u32 %s159_s20, 4  ;;  %s99_s21 = int_to_ptr.vmem [resolvable:$true] %s98_s21 }
   0x6   :  { %120 = vmatpush3.bf16.msra.mxu0 %v131_v2  ;;  %s133_s1 = scalar_lea.vmem %s99_s21, 256  ;;  %p138_p1 = scmp.lt.s32.totalorder %s99_s21, %s99_s21 }
   0x7   :  { %p134_p0 = scmp.ne.s32.totalorder %s99_s21, %s133_s1  ;;  %p139_p2 = scmp.lt.s32.totalorder %s133_s1, %s133_s1 }
   0x9   :  { %122 = vmatmul.mubr.msk.bf16.vlgmr.msra.gmra.mrb[0].mxu0 %vm46_vm1, %v132_v3  ;;  %p140_p3 = por %p139_p2, %p138_p1 }
   0xb   :  { %p141_p4 = pnand %p140_p3, %p134_p0 }
  0xdc   :  { %v84_v5 = vpop.f32.mrb[0].mxu0 }
  0xdd   :  { %v85_v6 = vadd.f32 %v109_v4, %v84_v5  ;;  %v123_v7 = vpop.f32.mrb[1].mxu0 }
  0xde   :  { %v87_v8 = vpop.f32.mrb[2].mxu0 }
  0xdf   :  { %91 = vst.msk [vmem:[#allocation2] sm:$0xff] %vm46_vm1, %v85_v6  ;;  %v88_v9 = vadd.f32 %v109_v4, %v87_v8  ;;  %v124_v10 = vpop.f32.mrb[3].mxu0 }
  0xe1   :  { %92 = vst.msk [vmem:[#allocation2 + $0x8] sm:$0xff] %vm46_vm1, %v88_v9 }
  0xe2   :  { %144 = shalt.err (!%p141_p4)
}
  0xe3   :  { %s145_s22 = scalar_lea.hbm %s209_s3, 256 }
  0xe4   :  { %p146_p5 = scmp.ne.s32.totalorder %s209_s3, %s145_s22  ;;  %p149_p6 = scmp.lt.u32.totalorder %s145_s22, %s209_s3 }
  0xe6   :  { %p151_p7 = pnand %p149_p6, %p146_p5 }
  0xe8   :  { %154 = shalt.err (!%p151_p7)
}
  0xe9   :  { %s160_s27 = smov 128   ;;  %s161_s28 = smov 8  }
  0xea   :  { %104 = dma.vmem_to_hbm [thread:$0]  %s99_s21, 256, %s209_s3, [#allocation3], %s160_s27, %s160_s27, %s161_s28  }
  0xeb   :  { %155 = dma.done.wait [#allocation3], 256  }
  0xec   :  { %156 = vsyncadd [#allocation3], 4294967040 }
  0xed   :  { %108 = vsyncpa [#allocation3], 1 }

// kernel: multi_head_attention.8
= control target key start
LH: loop header
LB: loop body
LE: loop exit
PB: predicated region body
PF: predicated region fallthrough
CT: control target
= control target key end

     0   :  { %s1271_s15 = smov 0   ;;  %s1273_s16 = smov 0   ;;  %s1464_s0 = inlined_call_operand.vmem [shape: bf16[2,4,8,8], index: 0, kind: input, shape index: {}]   ;;  %s1465_s1 = inlined_call_operand.vmem [shape: bf16[2,4,8,8], index: 1, kind: input, shape index: {}]   ;;  %s1466_s2 = inlined_call_operand.vmem [shape: bf16[2,4,8,8], index: 2, kind: input, shape index: {}]   ;;  %s1467_s3 = inlined_call_operand.vmem [shape: bf16[2,8,8], index: 3, kind: input, shape index: {}]   ;;  %s1468_s4 = inlined_call_operand.vmem [shape: bf16[2,4,8,8], index: 4, kind: output, shape index: {}]  }
   0x1   :  { %s1275_s17 = smov 0  }
   0x2 LB: > { %s33_s18 = sadd.s32 1, %s1236_s16  ;;  %p1076_p0 = scmp.ge.s32.totalorder %s1240_s17, 1  ;;  %s1240_s17 = sphi %s1275_s17, %s14_s17   ;;  %s1236_s16 = sphi %s1273_s16, %s1470_s16   ;;  %s1232_s15 = sphi %s1271_s15, %s1469_s15  }
   0x3   : > { %p35_p1 = scmp.ge.s32.totalorder %s33_s18, 2  ;;  %p237_p2 = scmp.lt.s32.totalorder %s1240_s17, 3 }
   0x5   : > { %s1472_s18 = smov (%p35_p1, %s33_s18), 0  ;;  %p238_p3 = pnand %p1076_p0, %p237_p2 }
   0x6   : > { %p295_p4 = scmp.lt.s32.totalorder (!%p238_p3), %s1232_s15, 1  ;;  %vm351_vm0 = vcmask (!%p238_p3), 64512   ;;  %v1242_v0 = vmov (!%p238_p3), 0.0   ;;  %vm1243_vm1 = vmmov (!%p238_p3), 0   ;;  %vm342_vm2 = vcmask (!%p238_p3), 7168  }
   0x7   : > { %241 = sbr.rel (%p238_p3) target bundleno = 836 (0x344), region = 36  ;;  %1116 = vmatprep.subr.bf16.mxu0 (!%p238_p3), %v1242_v0  ;;  %352 = vst.msk [vmem:[#allocation4] sm:$0xff] (!%p238_p3), %vm351_vm0, %v1242_v0  ;;  %353 = vst.msk [vmem:[#allocation4 + $0x8] sm:$0xff] (!%p238_p3), %vm351_vm0, %v1242_v0  ;;  %1122 = vmatprep.subr.bf16.mxu1 (!%p238_p3), %v1242_v0  ;;  %v1244_v13 = vmov (!%p238_p3), -inf   ;;  %v1245_v40 = vmov (!%p238_p3), 0   ;;  %vm690_vm4 = vcmask (!%p238_p3), 1043456  }
   0x8   : > { %354 = vst.msk [vmem:[#allocation4 + $0x10] sm:$0xff] (!%p238_p3), %vm351_vm0, %v1242_v0  ;;  %355 = vst.msk [vmem:[#allocation4 + $0x18] sm:$0xff] (!%p238_p3), %vm351_vm0, %v1242_v0  ;;  %1118 = vmatprep.mubr.msk.bf16.mxu0 (!%p238_p3), %vm1243_vm1, %v1242_v0  ;;  %1124 = vmatprep.mubr.msk.bf16.mxu1 (!%p238_p3), %vm1243_vm1, %v1242_v0  ;;  %vm927_vm5 = vcmask (!%p238_p3), 60416  }
   0x9   : > { %343 = vst.msk [vmem:[#allocation2] sm:$0xff] (!%p238_p3), %vm342_vm2, %v1244_v13  ;;  %344 = vst.msk [vmem:[#allocation2 + $0x8] sm:$0xff] (!%p238_p3), %vm342_vm2, %v1244_v13  ;;  %1192 = vset.pattern.permute.xlu0 (!%p238_p3), %v1245_v40  ;;  %1193 = vset.pattern.permute.xlu1 (!%p238_p3), %v1245_v40 }
   0xa   : > { %345 = vst.msk [vmem:[#allocation2 + $0x10] sm:$0xff] (!%p238_p3), %vm342_vm2, %v1244_v13  ;;  %346 = vst.msk [vmem:[#allocation2 + $0x18] sm:$0xff] (!%p238_p3), %vm342_vm2, %v1244_v13 }
   0xb   : > { %347 = vst.msk [vmem:[#allocation3] sm:$0xff] (!%p238_p3), %vm342_vm2, %v1242_v0  ;;  %348 = vst.msk [vmem:[#allocation3 + $0x8] sm:$0xff] (!%p238_p3), %vm342_vm2, %v1242_v0 }
   0xc   : > { %349 = vst.msk [vmem:[#allocation3 + $0x10] sm:$0xff] (!%p238_p3), %vm342_vm2, %v1242_v0  ;;  %350 = vst.msk [vmem:[#allocation3 + $0x18] sm:$0xff] (!%p238_p3), %vm342_vm2, %v1242_v0 }
   0xe   : > { %s1474_s15 = smov (!%p295_p4, %s1232_s15), 1 }
   0xf   : > { %s1306_s19 = sshll.u32 %s1474_s15, 4  ;;  %s1083_s26 = sshll.u32 %s1474_s15, 2 }
  0x10   : > { %s310_s22 = scalar_lea.vmem %s1465_s1, %s1306_s19  ;;  %s302_s25 = scalar_lea.vmem %s1464_s0, %s1306_s19  ;;  %v1369_v41 = vld [vmem:[#allocation2] sm:$0xff]  ;;  %v1374_v44 = vld [vmem:[#allocation2 + $0x8] sm:$0xff] }
  0x11   : > { %v360_v1 = vld [vmem:[%s310_s22] sm:$0xf]  ;;  %v361_v2 = vld [vmem:[%s310_s22 + $0x4] sm:$0xf]  ;;  %v362_v5 = vld [vmem:[%s310_s22 + $0x8] sm:$0xf]  ;;  %s328_s29 = scalar_lea.vmem %s1467_s3, %s1083_s26  ;;  %s318_s6 = scalar_lea.vmem %s1466_s2, %s1306_s19 }
  0x12   : > { %v375_v3 = vsel %vm351_vm0, %v360_v1, 0  ;;  %v421_v4 = vsel %vm351_vm0, %v361_v2, 0  ;;  %v363_v6 = vld [vmem:[%s310_s22 + $0xc] sm:$0xf]  ;;  %v356_v7 = vld [vmem:[%s302_s25] sm:$0xf]  ;;  %s336_s9 = scalar_lea.vmem %s1468_s4, %s1306_s19 }
  0x13   : > { %1117 = vmatpush3.bf16.xpose.msra.mxu0 %v375_v3  ;;  %1123 = vmatpush3.bf16.xpose.msra.mxu1 %v421_v4  ;;  %v357_v8 = vld [vmem:[%s302_s25 + $0x4] sm:$0xf]  ;;  %v467_v9 = vsel %vm351_vm0, %v362_v5, 0  ;;  %v513_v10 = vsel %vm351_vm0, %v363_v6, 0  ;;  %v358_v11 = vld [vmem:[%s302_s25 + $0x8] sm:$0xf] }
  0x14   : > { %1128 = vmatprep.subr.bf16.mxu0 %v1242_v0  ;;  %1134 = vmatprep.subr.bf16.mxu1 %v1242_v0  ;;  %v359_v12 = vld [vmem:[%s302_s25 + $0xc] sm:$0xf]  ;;  %v368_v14 = vld [vmem:[%s328_s29] sm:$0xf]  ;;  %v1384_v48 = vld [vmem:[#allocation2 + $0x10] sm:$0xff] }
  0x15   : > { %v369_v15 = vunpack.c.l.bf16 %v368_v14  ;;  %v1394_v52 = vld [vmem:[#allocation2 + $0x18] sm:$0xff]  ;;  %v364_v57 = vld [vmem:[%s318_s6] sm:$0xf]  ;;  %v365_v59 = vld [vmem:[%s318_s6 + $0x4] sm:$0xf] }
  0x16   : > { %v692_v58 = vsel %vm690_vm4, %v364_v57, 0  ;;  %v738_v60 = vsel %vm690_vm4, %v365_v59, 0  ;;  %v366_v61 = vld [vmem:[%s318_s6 + $0x8] sm:$0xf]  ;;  %v367_v63 = vld [vmem:[%s318_s6 + $0xc] sm:$0xf] }
  0x17   : > { %vm555_vm3 = vcmp.ne.f32.partialorder %v369_v15, 0.0  ;;  %v784_v62 = vsel %vm690_vm4, %v366_v61, 0  ;;  %v830_v1 = vsel %vm690_vm4, %v367_v63, 0  ;;  %v628_v40 = vld [vmem:[#allocation3 + $0x10] sm:$0xff] }
  0x1a   : > { %1119 = vmatmul.mubr.msk.bf16.vlgmr.msra.gmra.mrb[0].mxu0 %vm351_vm0, %v356_v7  ;;  %1125 = vmatmul.mubr.msk.bf16.vlgmr.msra.gmra.mrb[0].mxu1 %vm351_vm0, %v357_v8 }
  0x1b   : > { %1129 = vmatpush3.bf16.xpose.msra.mxu0 %v467_v9  ;;  %1135 = vmatpush3.bf16.xpose.msra.mxu1 %v513_v10 }
  0x1c   : > { %1130 = vmatprep.mubr.msk.bf16.mxu0 %vm1243_vm1, %v1242_v0  ;;  %1136 = vmatprep.mubr.msk.bf16.mxu1 %vm1243_vm1, %v1242_v0 }
  0x1d   : > { %1140 = vmatprep.subr.bf16.mxu0 %v1242_v0  ;;  %1146 = vmatprep.subr.bf16.mxu1 %v1242_v0 }
  0x22   : > { %1131 = vmatmul.mubr.msk.bf16.vlgmr.msra.gmra.mrb[4].mxu0 %vm351_vm0, %v358_v11  ;;  %1137 = vmatmul.mubr.msk.bf16.vlgmr.msra.gmra.mrb[4].mxu1 %vm351_vm0, %v359_v12 }
  0x23   : > { %1142 = vmatprep.mubr.msk.bf16.mxu0 %vm1243_vm1, %v1242_v0  ;;  %1148 = vmatprep.mubr.msk.bf16.mxu1 %vm1243_vm1, %v1242_v0 }
  0x24   : > { %1141 = vmatpush3.bf16.msra.mxu0 %v692_v58  ;;  %1147 = vmatpush3.bf16.msra.mxu1 %v738_v60 }
  0x25   : > { %1152 = vmatprep.subr.bf16.mxu0 %v1242_v0  ;;  %1158 = vmatprep.subr.bf16.mxu1 %v1242_v0 }
  0xed   : > { %v411_v16 = vpop.f32.mrb[0].mxu0  ;;  %v457_v17 = vpop.f32.mrb[0].mxu1 }
  0xee   : > { %v1120_v18 = vpop.f32.mrb[1].mxu0  ;;  %v1126_v19 = vpop.f32.mrb[1].mxu1  ;;  %v1353_v20 = vsel %vm555_vm3, %v369_v15, %v411_v16  ;;  %v1356_v21 = vsel %vm555_vm3, %v369_v15, %v457_v17 }
  0xef   : > { %v414_v22 = vpop.f32.mrb[2].mxu0  ;;  %v566_v23 = vsel %vm351_vm0, %v1353_v20, -inf  ;;  %v460_v24 = vpop.f32.mrb[2].mxu1  ;;  %v569_v27 = vsel %vm351_vm0, %v1356_v21, -inf }
  0xf0   : > { %567 = vmax.xlane.f32.xlu0 %v566_v23  ;;  %v1121_v25 = vpop.f32.mrb[3].mxu0  ;;  %v1127_v26 = vpop.f32.mrb[3].mxu1 }
  0xf4   : > { %570 = vmax.xlane.f32.xlu0 %v569_v27 }
  0xf5   : > { %v503_v28 = vpop.f32.mrb[4].mxu0  ;;  %v549_v29 = vpop.f32.mrb[4].mxu1 }
  0xf6   : > { %v1132_v30 = vpop.f32.mrb[5].mxu0  ;;  %v1138_v31 = vpop.f32.mrb[5].mxu1  ;;  %v560_v32 = vsel %vm555_vm3, %v369_v15, %v503_v28  ;;  %v1364_v33 = vsel %vm555_vm3, %v369_v15, %v549_v29 }
  0xf7   : > { %v506_v34 = vpop.f32.mrb[6].mxu0  ;;  %v572_v35 = vsel %vm351_vm0, %v560_v32, -inf  ;;  %v552_v36 = vpop.f32.mrb[6].mxu1  ;;  %v575_v39 = vsel %vm351_vm0, %v1364_v33, -inf }
  0xf8   : > { %573 = vmax.xlane.f32.xlu1 %v572_v35  ;;  %v1133_v37 = vpop.f32.mrb[7].mxu0  ;;  %v1139_v38 = vpop.f32.mrb[7].mxu1  ;;  %v627_v36 = vld [vmem:[#allocation3 + $0x8] sm:$0xff] }
  0xfc   : > { %576 = vmax.xlane.f32.xlu1 %v575_v39 }
 0x17d   : > { %v568_v42 = vpop.xlane.xlu0 %567 }
 0x17e   : > { %v1372_v43 = vmax.f32 %v1369_v41, %v568_v42 }
 0x180   : > { %v582_v45 = vsub.f32 %v1369_v41, %v1372_v43  ;;  %880 = vst.msk [vmem:[#allocation2] sm:$0xff] %vm342_vm2, %v1372_v43  ;;  %596 = vperm.xlu0 %1192, %v1372_v43  }
 0x181   : > { %v571_v46 = vpop.xlane.xlu0 %570 }
 0x182   : > { %v1382_v47 = vmax.f32 %v1374_v44, %v571_v46 }
 0x184   : > { %v583_v49 = vsub.f32 %v1374_v44, %v1382_v47  ;;  %881 = vst.msk [vmem:[#allocation2 + $0x8] sm:$0xff] %vm342_vm2, %v1382_v47  ;;  %601 = vperm.xlu1 %1193, %v1382_v47   ;;  %v629_v44 = vld [vmem:[#allocation3 + $0x18] sm:$0xff] }
 0x185   : > { %v574_v50 = vpop.xlane.xlu1 %573 }
 0x186   : > { %v1392_v51 = vmax.f32 %v1384_v48, %v574_v50  ;;  %v588_v24 = vmul.f32 1.442695, %v583_v49 }
 0x188   : > { %v584_v53 = vsub.f32 %v1384_v48, %v1392_v51  ;;  %882 = vst.msk [vmem:[#allocation2 + $0x10] sm:$0xff] %vm342_vm2, %v1392_v51  ;;  %606 = vperm.xlu1 %1193, %v1392_v51  }
 0x189   : > { %v577_v54 = vpop.xlane.xlu1 %576 }
 0x18a   : > { %v1402_v55 = vmax.f32 %v1394_v52, %v577_v54  ;;  %v590_v27 = vmul.f32 1.442695, %v584_v53  ;;  %v655_v53 = vld [vmem:[#allocation4] sm:$0xff] }
 0x18c   : > { %v585_v56 = vsub.f32 %v1394_v52, %v1402_v55  ;;  %883 = vst.msk [vmem:[#allocation2 + $0x18] sm:$0xff] %vm342_vm2, %v1402_v55  ;;  %611 = vperm.xlu1 %1193, %v1402_v55  }
 0x18e   : > { %v592_v28 = vmul.f32 1.442695, %v585_v56  ;;  %v656_v56 = vld [vmem:[#allocation4 + $0x8] sm:$0xff] }
 0x1ff   : > { %v597_v2 = vpop.permute.xlu0 %596 }
 0x200   : > { %v614_v3 = vsub.f32 %v1353_v20, %v597_v2  ;;  %v657_v2 = vld [vmem:[#allocation4 + $0x10] sm:$0xff] }
 0x202   : > { %v618_v4 = vmul.f32 1.442695, %v614_v3 }
 0x203   : > { %v602_v5 = vpop.permute.xlu1 %601 }
 0x204   : > { %1194 = vpow2.f32 %v618_v4  ;;  %v615_v6 = vsub.f32 %v1356_v21, %v602_v5 }
 0x206   : > { %v620_v7 = vmul.f32 1.442695, %v615_v6 }
 0x207   : > { %v607_v8 = vpop.permute.xlu1 %606 }
 0x208   : > { %1196 = vpow2.f32 %v620_v7  ;;  %v616_v9 = vsub.f32 %v560_v32, %v607_v8 }
 0x20a   : > { %v622_v10 = vmul.f32 1.442695, %v616_v9  ;;  %v658_v9 = vld [vmem:[#allocation4 + $0x18] sm:$0xff] }
 0x20b   : > { %v612_v11 = vpop.permute.xlu1 %611 }
 0x20c   : > { %1198 = vpow2.f32 %v622_v10  ;;  %v617_v12 = vsub.f32 %v1364_v33, %v612_v11  ;;  %v626_v33 = vld [vmem:[#allocation3] sm:$0xff] }
 0x20e   : > { %v1195_v13 = vpop.eup %1194  ;;  %v624_v14 = vmul.f32 1.442695, %v617_v12 }
 0x20f   : > { %v634_v15 = vsel %vm351_vm0, %v1195_v13, 0.0  ;;  %v683_v16 = vpack.c.bf16 %v1195_v13, %v1195_v13 }
 0x210   : > { %1200 = vpow2.f32 %v624_v14  ;;  %635 = vadd.xlane.f32.xlu1 %v634_v15 }
 0x211   : > { %1143 = vmatmul.mubr.msk.bf16.vlgmr.msra.gmra.mrb[8].mxu0 %vm351_vm0, %v683_v16  ;;  %1202 = vpow2.f32 %v588_v24 }
 0x212   : > { %v1197_v17 = vpop.eup %1196  ;;  %1153 = vmatpush3.bf16.msra.mxu0 %v784_v62  ;;  %1154 = vmatprep.mubr.msk.bf16.mxu0 %vm1243_vm1, %v1242_v0 }
 0x213   : > { %v637_v18 = vsel %vm351_vm0, %v1197_v17, 0.0  ;;  %v684_v19 = vpack.c.bf16 %v1197_v17, %v1197_v17 }
 0x214   : > { %638 = vadd.xlane.f32.xlu0 %v637_v18 }
 0x215   : > { %1149 = vmatmul.mubr.msk.bf16.vlgmr.msra.gmra.mrb[8].mxu1 %vm351_vm0, %v684_v19 }
 0x216   : > { %v1199_v20 = vpop.eup %1198  ;;  %1159 = vmatpush3.bf16.msra.mxu1 %v830_v1  ;;  %1160 = vmatprep.mubr.msk.bf16.mxu1 %vm1243_vm1, %v1242_v0  ;;  %v586_v0 = vmul.f32 1.442695, %v582_v45 }
 0x217   : > { %v640_v21 = vsel %vm351_vm0, %v1199_v20, 0.0  ;;  %v685_v22 = vpack.c.bf16 %v1199_v20, %v1199_v20 }
 0x218   : > { %641 = vadd.xlane.f32.xlu1 %v640_v21  ;;  %1204 = vpow2.f32 %v586_v0 }
 0x219   : > { %1155 = vmatmul.mubr.msk.bf16.vlgmr.msra.gmra.mrb[12].mxu0 %vm351_vm0, %v685_v22  ;;  %1206 = vpow2.f32 %v590_v27 }
 0x21a   : > { %v1201_v23 = vpop.eup %1200  ;;  %1208 = vpow2.f32 %v592_v28 }
 0x21b   : > { %v643_v25 = vsel %vm351_vm0, %v1201_v23, 0.0  ;;  %v686_v26 = vpack.c.bf16 %v1201_v23, %v1201_v23  ;;  %v1203_v29 = vpop.eup %1202 }
 0x21c   : > { %644 = vadd.xlane.f32.xlu1 %v643_v25  ;;  %v631_v38 = vmul.f32 %v1203_v29, %v627_v36 }
 0x21d   : > { %1161 = vmatmul.mubr.msk.bf16.vlgmr.msra.gmra.mrb[12].mxu1 %vm351_vm0, %v686_v26 }
 0x222   : > { %v1205_v30 = vpop.eup %1204 }
 0x223   : > { %v1207_v31 = vpop.eup %1206  ;;  %v630_v34 = vmul.f32 %v1205_v30, %v626_v33 }
 0x224   : > { %v1209_v32 = vpop.eup %1208  ;;  %v632_v42 = vmul.f32 %v1207_v31, %v628_v40 }
 0x225   : > { %v633_v47 = vmul.f32 %v1209_v32, %v629_v44 }
 0x22a   : > { %666 = vperm.xlu0 %1192, %v1203_v29  }
 0x22d   : > { %661 = vperm.xlu1 %1193, %v1205_v30  }
 0x231   : > { %671 = vperm.xlu1 %1193, %v1207_v31  }
 0x235   : > { %676 = vperm.xlu1 %1193, %v1209_v32  }
 0x29d   : > { %v636_v35 = vpop.xlane.xlu1 %635 }
 0x29e   : > { %v646_v37 = vadd.f32 %v636_v35, %v630_v34 }
 0x2a0   : > { %651 = vst.msk [vmem:[#allocation3] sm:$0xff] %vm342_vm2, %v646_v37 }
 0x2a1   : > { %v639_v39 = vpop.xlane.xlu0 %638 }
 0x2a2   : > { %v647_v41 = vadd.f32 %v639_v39, %v631_v38 }
 0x2a4   : > { %652 = vst.msk [vmem:[#allocation3 + $0x8] sm:$0xff] %vm342_vm2, %v647_v41 }
 0x2a5   : > { %v642_v43 = vpop.xlane.xlu1 %641 }
 0x2a6   : > { %v648_v45 = vadd.f32 %v642_v43, %v632_v42 }
 0x2a7   : > { %v891_v46 = vld [vmem:[#allocation3] sm:$0xff] }
 0x2a8   : > { %653 = vst.msk [vmem:[#allocation3 + $0x10] sm:$0xff] %vm342_vm2, %v648_v45  ;;  %897 = vperm.xlu1 %1193, %v891_v46  }
 0x2a9   : > { %v645_v48 = vpop.xlane.xlu1 %644  ;;  %v667_v57 = vpop.permute.xlu0 %666 }
 0x2aa   : > { %v649_v49 = vadd.f32 %v645_v48, %v633_v47  ;;  %v680_v63 = vmul.f32 %v667_v57, %v656_v56 }
 0x2ab   : > { %v892_v50 = vld [vmem:[#allocation3 + $0x8] sm:$0xff] }
 0x2ac   : > { %654 = vst.msk [vmem:[#allocation3 + $0x18] sm:$0xff] %vm342_vm2, %v649_v49  ;;  %902 = vperm.xlu0 %1192, %v892_v50  }
 0x2ad   : > { %v662_v54 = vpop.permute.xlu1 %661 }
 0x2ae   : > { %v679_v55 = vmul.f32 %v662_v54, %v655_v53 }
 0x2af   : > { %v893_v51 = vld [vmem:[#allocation3 + $0x10] sm:$0xff] }
 0x2b0   : > { %907 = vperm.xlu1 %1193, %v893_v51  }
 0x2b1   : > { %v672_v61 = vpop.permute.xlu1 %671 }
 0x2b2   : > { %v681_v7 = vmul.f32 %v672_v61, %v657_v2 }
 0x2b3   : > { %v894_v52 = vld [vmem:[#allocation3 + $0x18] sm:$0xff] }
 0x2b4   : > { %912 = vperm.xlu0 %1192, %v894_v52  }
 0x2b5   : > { %v677_v10 = vpop.permute.xlu1 %676 }
 0x2b6   : > { %v682_v15 = vmul.f32 %v677_v10, %v658_v9 }
 0x2e4   : > { %v728_v58 = vpop.f32.mrb[8].mxu0 }
 0x2e5   : > { %v872_v59 = vadd.f32 %v728_v58, %v679_v55  ;;  %v1144_v60 = vpop.f32.mrb[9].mxu0 }
 0x2e6   : > { %v731_v62 = vpop.f32.mrb[10].mxu0 }
 0x2e7   : > { %876 = vst.msk [vmem:[#allocation4] sm:$0xff] %vm351_vm0, %v872_v59  ;;  %v1145_v1 = vpop.f32.mrb[11].mxu0 }
 0x2e8   : > { %v774_v3 = vpop.f32.mrb[8].mxu1 }
 0x2e9   : > { %v873_v4 = vadd.f32 %v774_v3, %v680_v63  ;;  %v1150_v5 = vpop.f32.mrb[9].mxu1 }
 0x2ea   : > { %v777_v6 = vpop.f32.mrb[10].mxu1 }
 0x2eb   : > { %877 = vst.msk [vmem:[#allocation4 + $0x8] sm:$0xff] %vm351_vm0, %v873_v4  ;;  %v1151_v8 = vpop.f32.mrb[11].mxu1 }
 0x2ec   : > { %v820_v11 = vpop.f32.mrb[12].mxu0 }
 0x2ed   : > { %v874_v12 = vadd.f32 %v820_v11, %v681_v7  ;;  %v1156_v13 = vpop.f32.mrb[13].mxu0 }
 0x2ee   : > { %v823_v14 = vpop.f32.mrb[14].mxu0  ;;  %v887_v26 = vld [vmem:[#allocation4] sm:$0xff] }
 0x2ef   : > { %878 = vst.msk [vmem:[#allocation4 + $0x10] sm:$0xff] %vm351_vm0, %v874_v12  ;;  %v1157_v16 = vpop.f32.mrb[15].mxu0 }
 0x2f0   : > { %v866_v17 = vpop.f32.mrb[12].mxu1 }
 0x2f1   : > { %v875_v18 = vadd.f32 %v866_v17, %v682_v15  ;;  %v1162_v19 = vpop.f32.mrb[13].mxu1 }
 0x2f2   : > { %v869_v20 = vpop.f32.mrb[14].mxu1  ;;  %v888_v30 = vld [vmem:[#allocation4 + $0x8] sm:$0xff] }
 0x2f3   : > { %879 = vst.msk [vmem:[#allocation4 + $0x18] sm:$0xff] %vm351_vm0, %v875_v18  ;;  %v1163_v21 = vpop.f32.mrb[15].mxu1 }
 0x2f6   : > { %v889_v34 = vld [vmem:[#allocation4 + $0x10] sm:$0xff] }
 0x2fa   : > { %v890_v38 = vld [vmem:[#allocation4 + $0x18] sm:$0xff] }
 0x327   : > { %v898_v22 = vpop.permute.xlu1 %897 }
 0x328   : > { %1210 = vrcp.f32 %v898_v22 }
 0x32b   : > { %v903_v23 = vpop.permute.xlu0 %902 }
 0x32c   : > { %1212 = vrcp.f32 %v903_v23 }
 0x32f   : > { %v908_v24 = vpop.permute.xlu1 %907 }
 0x330   : > { %1214 = vrcp.f32 %v908_v24 }
 0x332   : > { %v1211_v25 = vpop.eup %1210 }
 0x333   : > { %v916_v0 = vmul.f32 %v1211_v25, %v887_v26  ;;  %v913_v27 = vpop.permute.xlu0 %912 }
 0x334   : > { %1216 = vrcp.f32 %v913_v27 }
 0x335   : > { %v923_v28 = vpack.c.bf16 %v916_v0, %v916_v0 }
 0x336   : > { %v1213_v29 = vpop.eup %1212 }
 0x337   : > { %928 = vst.msk [vmem:[%s336_s9] sm:$0xf] %vm927_vm5, %v923_v28  ;;  %v918_v31 = vmul.f32 %v1213_v29, %v888_v30 }
 0x339   : > { %v924_v32 = vpack.c.bf16 %v918_v31, %v918_v31 }
 0x33a   : > { %v1215_v33 = vpop.eup %1214 }
 0x33b   : > { %929 = vst.msk [vmem:[%s336_s9 + $0x4] sm:$0xf] %vm927_vm5, %v924_v32  ;;  %v920_v35 = vmul.f32 %v1215_v33, %v889_v34 }
 0x33d   : > { %v925_v36 = vpack.c.bf16 %v920_v35, %v920_v35 }
 0x33e   : > { %v1217_v37 = vpop.eup %1216 }
 0x33f   : > { %930 = vst.msk [vmem:[%s336_s9 + $0x8] sm:$0xf] %vm927_vm5, %v925_v36  ;;  %v922_v39 = vmul.f32 %v1217_v37, %v890_v38 }
 0x341   : > { %v926_v40 = vpack.c.bf16 %v922_v39, %v922_v39 }
 0x343   : > { %931 = vst.msk [vmem:[%s336_s9 + $0xc] sm:$0xf] %vm927_vm5, %v926_v40 }
 0x344 PF: > { %s14_s17 = sadd.s32 1, %s1240_s17   ;;  %s1469_s15 = smov %s1236_s16 }
 0x345   : > { %p11_p5 = scmp.ge.s32.totalorder %s14_s17, 4   ;;  %s1470_s16 = smov %s1472_s18 }
 0x347   :  { %13 = sbr.rel (!%p11_p5) target bundleno = 2 (0x2), region = 83 }

</bundles_post_ra>
